<compile_context>
chip_gen: v5e
topology: v5e:2x2
jax: 0.10.0
libtpu: 0.0.40
codegen_flags: <defaults>
</compile_context>

<pallas_src>
import functools
import math

import jax
import jax.numpy as jnp
from jax.experimental import pallas as pl
from jax.experimental.pallas import tpu as pltpu


# ---------------------------------------------------------------------------
# Kernel: L_p-normalize each row of a (TILE_B, D) tile over the last dim.
# ---------------------------------------------------------------------------
def _normalize_kernel(x_ref, o_ref, *, power):
    xf = x_ref[...].astype(jnp.float32)                      # (tb, D)
    if power == 2:
        ssum = jnp.sum(xf * xf, axis=-1, keepdims=True)      # (tb, 1)
        inv = jax.lax.rsqrt(ssum)                            # one EUP op / row
    else:
        p = float(power)
        if p.is_integer() and 1.0 <= p <= 8.0:
            # small integer power -> repeated multiplies on the 4-wide VALU
            acc = xf
            for _ in range(int(p) - 1):
                acc = acc * xf
        else:
            acc = xf ** jnp.float32(power)
        ssum = jnp.sum(acc, axis=-1, keepdims=True)
        # fractional exponent only on the tiny per-row sums
        inv = ssum ** jnp.float32(-1.0 / power)
    # Re-read the storage-dtype block for the normalize instead of reusing the
    # big f32 upcast (keeps the live f32 temp small -> less vreg/VMEM pressure,
    # bigger affordable tiles, esp. on v7x's 64 MiB VMEM).
    o_ref[...] = (x_ref[...].astype(jnp.float32) * inv).astype(o_ref.dtype)


# ---------------------------------------------------------------------------
# Tile selection: byte-budgeted, dtype-aware, generation-aware.
# ---------------------------------------------------------------------------
def _round_up(x, m):
    return ((x + m - 1) // m) * m


def _sublane_align(dtype):
    # f32 -> 8, bf16 -> 16, int8/fp8 -> 32 (sub-32-bit dtypes pack on sublanes)
    return max(8, 32 // jnp.dtype(dtype).itemsize)


def _vmem_caps():
    """(buffer budget, vmem_limit_bytes) derived from this chip's VMEM."""
    cap = 64 << 20  # conservative fallback = v7x per-TC VMEM
    try:
        info = pltpu.get_tpu_info()
        cap = int(getattr(info, "vmem_capacity_bytes", cap)) or cap
    except Exception:
        pass
    return int(cap * 0.40), int(cap * 0.75)


def _pick_tile_rows(b, d, dtype, budget_bytes):
    align = _sublane_align(dtype)
    itemsize = jnp.dtype(dtype).itemsize
    # Per tile-row footprint: double-buffered input + output blocks in the
    # storage dtype, plus ~2 f32 temporary rows inside the kernel body.
    per_row = d * (4 * itemsize + 8)
    tb = (budget_bytes // max(per_row, 1)) // align * align
    tb = max(tb, align)
    # Keep the grid length >= 2 when B allows it (v7x has 2 TCs on the grid).
    tb = min(tb, _round_up(max(pl.cdiv(b, 2), 1), align))
    if tb >= b:
        tb = b  # full-extent block is always layout-legal (grid = 1)
    return tb


# ---------------------------------------------------------------------------
# Wrapper
# ---------------------------------------------------------------------------
def _normalize_2d(x, power, tile_rows=None):
    B, D = x.shape
    budget, vmem_limit = _vmem_caps()
    if tile_rows is not None:
        tb = min(_round_up(int(tile_rows), _sublane_align(x.dtype)), B)
        tb = B if tb >= B else tb
    else:
        tb = _pick_tile_rows(B, D, x.dtype, budget)

    kernel = functools.partial(_normalize_kernel, power=power)
    itemsize = jnp.dtype(x.dtype).itemsize
    cost = pl.CostEstimate(
        flops=3 * B * D,              # square, row-sum, scale
        transcendentals=B,            # one rsqrt / pow per row
        bytes_accessed=2 * B * D * itemsize,
    )

    return pl.pallas_call(
        kernel,
        out_shape=jax.ShapeDtypeStruct((B, D), x.dtype),
        grid=(pl.cdiv(B, tb),),       # ragged last block OK: rows independent
        in_specs=[pl.BlockSpec((tb, D), lambda i: (i, 0))],
        out_specs=pl.BlockSpec((tb, D), lambda i: (i, 0)),
        compiler_params=pltpu.CompilerParams(
            dimension_semantics=("parallel",),
            vmem_limit_bytes=vmem_limit),
        cost_estimate=cost,
    )(x)


def normalize_pallas(x, power=2, tile_rows=None):
    """L_p-normalize over dim 1, matching the PyTorch Normalize module."""
    assert x.ndim >= 2, "Normalize reduces over dim 1; need at least 2 dims"
    if x.ndim == 2:
        return _normalize_2d(x, power, tile_rows)
    # N-D: move dim 1 (the normalized axis) to the last position, flatten the
    # rest into rows, run the 2-D kernel, undo.  Layout plumbing only.
    # TODO(synk): for very small channel counts the lane axis is narrow here;
    # a channels-on-sublanes variant would keep stores lane-dense.
    perm = (0,) + tuple(range(2, x.ndim)) + (1,)
    xt = jnp.transpose(x, perm)
    rows = math.prod(xt.shape[:-1])
    out2 = _normalize_2d(xt.reshape(rows, xt.shape[-1]), power, tile_rows)
    out = out2.reshape(xt.shape)
    inv_perm = [0] * x.ndim
    for pos, ax in enumerate(perm):
        inv_perm[ax] = pos
    return jnp.transpose(out, tuple(inv_perm))


class NormalizePallas:
    """Functional equivalent of the PyTorch Normalize module."""

    def __init__(self, power=2):
        self.power = power

    def __call__(self, x):
        return normalize_pallas(x, power=self.power)


# ---------------------------------------------------------------------------
# Plain-JAX reference mirroring the PyTorch module.
# ---------------------------------------------------------------------------
def normalize_ref(x, power=2):
    xf = x.astype(jnp.float32)
    norm = jnp.sum(xf ** power, axis=1, keepdims=True) ** (1.0 / power)
    return (xf / norm).astype(x.dtype)


if __name__ == "__main__":
    key = jax.random.PRNGKey(0)
    k1, k2, k3, k4 = jax.random.split(key, 4)

    norm = NormalizePallas(power=2)

    # 1) 2-D f32 features (typical contrastive-loss usage); grid = 2 tiles.
    x1 = jax.random.normal(k1, (16, 256), dtype=jnp.float32)
    o1 = jax.block_until_ready(norm(x1))
    r1 = normalize_ref(x1, power=2)
    assert o1.shape == r1.shape, (o1.shape, r1.shape)
    assert jnp.allclose(o1, r1, rtol=1e-5, atol=1e-6), \
        float(jnp.max(jnp.abs(o1 - r1)))

    # 2) bf16 with a batch that is NOT a multiple of the tile (ragged cdiv path,
    #    dtype-aware sublane alignment of 16).
    x2 = jax.random.normal(k2, (20, 384), dtype=jnp.bfloat16)
    o2 = jax.block_until_ready(normalize_pallas(x2, power=2))
    r2 = normalize_ref(x2, power=2)
    assert jnp.allclose(o2.astype(jnp.float32), r2.astype(jnp.float32),
                        rtol=2e-2, atol=2e-2)

    # 3) 4-D input normalized over dim 1 (the nn.Module's sum(1) semantics).
    x3 = jax.random.normal(k3, (2, 4, 8, 8), dtype=jnp.float32)
    o3 = jax.block_until_ready(normalize_pallas(x3, power=2))
    r3 = x3 / jnp.sqrt(jnp.sum(x3 * x3, axis=1, keepdims=True))
    assert jnp.allclose(o3, r3, rtol=1e-5, atol=1e-6)

    # 4) power != 2 path (positive inputs so the fractional root is defined).
    x4 = jax.random.uniform(k4, (16, 128), dtype=jnp.float32,
                            minval=0.1, maxval=1.0)
    o4 = jax.block_until_ready(normalize_pallas(x4, power=3))
    r4 = normalize_ref(x4, power=3)
    assert jnp.allclose(o4, r4, rtol=1e-4, atol=1e-5)

    print("KERNEL_OK")
</pallas_src>

<mosaic_0001>
module attributes {stable_mosaic.version = 11 : i64} {
  func.func @_normalize_kernel(%arg0: i32, %arg1: memref<8x256xf32, #tpu.memory_space<vmem>>, %arg2: memref<8x256xf32, #tpu.memory_space<vmem>>) attributes {dimension_semantics = [#tpu.dimension_semantics<parallel>], iteration_bounds = array<i64: 2>, scalar_prefetch = 0 : i64, scratch_operands = 0 : i64, tpu.core_type = #tpu.core_type<tc>, window_params = [{transform_indices = @transform_0, window_bounds = array<i64: 8, 256>}, {transform_indices = @transform_1, window_bounds = array<i64: 8, 256>}]} {
    %c0 = arith.constant 0 : index
    %c0_0 = arith.constant 0 : index
    %0 = vector.load %arg1[%c0, %c0_0] : memref<8x256xf32, #tpu.memory_space<vmem>>, vector<8x256xf32>
    %1 = arith.mulf %0, %0 : vector<8x256xf32>
    %cst = arith.constant dense<0.000000e+00> : vector<8xf32>
    %2 = vector.multi_reduction <add>, %1, %cst [1] : vector<8x256xf32> to vector<8xf32>
    %3 = vector.shape_cast %2 : vector<8xf32> to vector<8x1xf32>
    %4 = math.rsqrt %3 : vector<8x1xf32>
    %c0_1 = arith.constant 0 : index
    %c0_2 = arith.constant 0 : index
    %5 = vector.load %arg1[%c0_1, %c0_2] : memref<8x256xf32, #tpu.memory_space<vmem>>, vector<8x256xf32>
    %6 = vector.broadcast %4 : vector<8x1xf32> to vector<8x256xf32>
    %7 = arith.mulf %5, %6 : vector<8x256xf32>
    %c0_3 = arith.constant 0 : index
    %c0_4 = arith.constant 0 : index
    %8 = vector.load %arg2[%c0_3, %c0_4] : memref<8x256xf32, #tpu.memory_space<vmem>>, vector<8x256xf32>
    tpu.vector_store %arg2[%c0_3, %c0_4], %7 {strides = array<i32>} : memref<8x256xf32, #tpu.memory_space<vmem>>, vector<8x256xf32>,
    return
  }
  func.func @transform_0(%arg0: i32) -> (i32, i32) {
    %c0_i32 = arith.constant 0 : i32
    %c0_i32_0 = arith.constant 0 : i32
    return %arg0, %c0_i32 : i32, i32
  }
  func.func @transform_1(%arg0: i32) -> (i32, i32) {
    %c0_i32 = arith.constant 0 : i32
    %c0_i32_0 = arith.constant 0 : i32
    return %arg0, %c0_i32 : i32, i32
  }
}

</mosaic_0001>

<bundles_post_ra>
// kernel: tpu_custom_call.1
= control target key start
LH: loop header
LB: loop body
LE: loop exit
PB: predicated region body
PF: predicated region fallthrough
CT: control target
= control target key end

     0   :  { %6 = vsyncpa [#allocation3], 0  ;;  %s542_s0 = inlined_call_operand.hbm [shape: f32[16,256], index: 0, kind: input, shape index: {}]   ;;  %s543_s1 = inlined_call_operand.hbm [shape: f32[16,256], index: 1, kind: output, shape index: {}]  }
   0x1   :  { %8 = vsyncpa [#allocation3 + $0x1], 0 }
   0x2   :  { %9 = vsyncpa [#allocation4], 0 }
   0x3   :  { %11 = vsyncpa [#allocation4 + $0x1], 0  ;;  %s415_s6 = smov 0   ;;  %s417_s7 = smov 0  }
   0x4   :  { %s419_s8 = smov 0   ;;  %s421_s9 = smov 0  }
   0x5 LB: > { %s436_s10 = sadd.s32 4294967295, %s403_s9   ;;  %s243_s11 = sadd.s32 4294967294, %s403_s9   ;;  %s403_s9 = sphi %s421_s9, %s553_s9   ;;  %s399_s8 = sphi %s419_s8, %s552_s8   ;;  %s395_s7 = sphi %s417_s7, %s551_s7   ;;  %s391_s6 = sphi %s415_s6, %s550_s6  }
   0x6   : > { %s440_s12 = sadd.s32 1, %s403_s9   ;;  %s24_s13 = sadd.s32 1, %s399_s8 }
   0x7   : > { %s21_s14 = ssub.s32 %s403_s9, %s440_s12  ;;  %p31_p0 = scmp.ne.s32.totalorder %s399_s8, %s395_s7 }
   0x8   : > { %p22_p1 = scmp.eq.s32.totalorder %s21_s14, 0  ;;  %p32_p2 = scmp.eq.s32.totalorder %s403_s9, 0 }
   0x9   : > { %p37_p3 = scmp.ne.s32.totalorder %s395_s7, %s391_s6  ;;  %p38_p4 = scmp.eq.s32.totalorder %s436_s10, 0 }
   0xa   : > { %s452_s15 = scalar_select %p22_p1, %s399_s8, %s24_s13  }
   0xb   : > { %p454_p5 = por %p32_p2, %p31_p0  ;;  %p458_p6 = por %p38_p4, %p37_p3 }
   0xc   : > { %p61_p7 = scmp.eq.s32.totalorder %s436_s10, 1  ;;  %p67_p8 = scmp.eq.s32.totalorder %s243_s11, 1 }
   0xd   : > { %p271_p10 = scmp.lt.s32.totalorder %s403_s9, 2  ;;  %s87_s20 = sand.u32 1, %s399_s8  }
   0xe   : > { %p465_p11 = por %p61_p7, %p31_p0  ;;  %p469_p12 = por %p67_p8, %p37_p3 }
   0xf   : > { %s257_s21 = sshll.u32 %s403_s9, 4  ;;  %s246_s22 = sshll.u32 %s87_s20, 4 }
  0x10   : > { %s96_s25 = scalar_lea.hbm %s542_s0, %s257_s21  ;;  %s91_s27 = scalar_lea.vmem [#allocation2], %s246_s22 }
  0x11   : > { %s98_s26 = sshll.u32 %s96_s25, 4  ;;  %s100_s28 = sshll.u32 %s91_s27, 4  ;;  %s99_s26 = int_to_ptr.hbm [resolvable:$true] %s98_s26  ;;  %s101_s28 = int_to_ptr.vmem [resolvable:$true] %s100_s28 }
  0x12   : > { %p480_p13 = pnand %p271_p10, %p454_p5  ;;  %p249_p0 = scmp.ge.s32.totalorder %s403_s9, 1 }
  0x13   : > { %p105_p1 = scmp.lt.s32.totalorder %s403_s9, 3  ;;  %s88_s30 = scalar_lea.sflag [#allocation3], %s87_s20 }
  0x14   : > { %s307_s2 = sshra.s32 %s99_s26, 4  ;;  %p311_p3 = pneg %p480_p13  ;;  %s308_s2 = int_to_ptr.hbm [resolvable:$true] %s307_s2 }
  0x15   : > { %s309_s3 = scalar_lea.hbm %s308_s2, 16  ;;  %s314_s11 = scalar_lea.hbm %s542_s0, 32 }
  0x16   : > { %p310_p2 = scmp.ne.s32.totalorder %s308_s2, %s309_s3  ;;  %p315_p5 = scmp.lt.s32.totalorder %s308_s2, %s542_s0 }
  0x17   : > { %p316_p8 = scmp.lt.s32.totalorder %s314_s11, %s309_s3 }
  0x18   : > { %p312_p4 = pnand %p311_p3, %p310_p2 }
  0x19   : > { %p317_p10 = por %p316_p8, %p315_p5 }
  0x1a   : > { %p313_p7 = pneg %p312_p4 }
  0x1c   : > { %p318_p9 = pnand %p317_p10, %p313_p7 }
  0x1e   : > { %321 = shalt.err (!%p318_p9)
}
  0x1f   : > { %266 = dma.hbm_to_vmem [thread:$0]  (!%p480_p13), %s99_s26, 256, %s101_s28, %s88_s30  }
  0x20   : > { %p106_p2 = pnand %p249_p0, %p105_p1 }
  0x21   : > { %s501_s16 = sand.u32 (!%p106_p2), 1, %s395_s7  }
  0x22   : > { %109 = sbr.rel (%p106_p2) target bundleno = 185 (0xb9), region = 24  ;;  %s250_s20 = sshll.u32 (!%p106_p2), %s501_s16, 4 }
  0x23   : > { %s112_s21 = scalar_lea.sflag (!%p106_p2), [#allocation3], %s501_s16  ;;  %s115_s22 = scalar_lea.vmem (!%p106_p2), [#allocation2], %s250_s20 }
  0x27   : > { %382 = dma.done.wait (%p458_p6), %s112_s21, 256  }
  0x28   : > { %384 = vsyncadd (%p458_p6), %s112_s21, 4294967040  ;;  %v135_v0 = vld [vmem:[%s115_s22] sm:$0xff]  ;;  %v136_v1 = vld [vmem:[%s115_s22 + $0x8] sm:$0xff]  ;;  %s258_s23 = sshll.u32 %s436_s10, 4  ;;  %s134_s26 = scalar_lea.vmem [#allocation5], %s250_s20 }
  0x29   : > { %v137_v2 = vmul.f32 %v135_v0, %v135_v0  ;;  %v138_v3 = vmul.f32 %v136_v1, %v136_v1  ;;  %s168_s25 = scalar_lea.hbm %s543_s1, %s258_s23  ;;  %s170_s27 = sshll.u32 %s134_s26, 4  ;;  %s171_s27 = int_to_ptr.vmem [resolvable:$true] %s170_s27 }
  0x2a   : > { %s172_s28 = sshll.u32 %s168_s25, 4  ;;  %s157_s10 = scalar_lea.sflag [#allocation4], %s501_s16  ;;  %s173_s28 = int_to_ptr.hbm [resolvable:$true] %s172_s28 }
  0x2b   : > { %v139_v4 = vadd.f32 %v138_v3, %v137_v2  ;;  %s351_s29 = sshra.s32 %s173_s28, 4  ;;  %s357_s4 = scalar_lea.hbm %s543_s1, 32  ;;  %s352_s29 = int_to_ptr.hbm [resolvable:$true] %s351_s29 }
  0x2c   : > { %s353_s30 = scalar_lea.hbm %s352_s29, 16  ;;  %p358_p0 = scmp.lt.s32.totalorder %s352_s29, %s543_s1 }
  0x2d   : > { %140 = vadd.xlane.f32.xlu0 %v139_v4  ;;  %p354_p6 = scmp.ne.s32.totalorder %s352_s29, %s353_s30  ;;  %p359_p1 = scmp.lt.s32.totalorder %s357_s4, %s353_s30 }
  0x2f   : > { %p355_p9 = pnand %p354_p6, %p465_p11  ;;  %p360_p3 = por %p359_p1, %p358_p0 }
  0x31   : > { %p356_p13 = pneg %p355_p9 }
  0x33   : > { %p361_p4 = pnand %p360_p3, %p356_p13 }
  0xa0   : > { %v141_v5 = vpop.xlane.xlu0 %140 }
  0xa1   : > { %305 = vrsqrt.f32 %v141_v5  ;;  %vm148_vm1 = vweird.f32 %v141_v5 }
  0xa7   : > { %v306_v6 = vpop.eup %305 }
  0xa8   : > { %v143_v7 = vmul.f32 %v306_v6, %v141_v5  ;;  %vm149_vm0 = vweird.f32 %v306_v6 }
  0xa9   : > { %vm150_vm2 = vmor %vm148_vm1, %vm149_vm0 }
  0xaa   : > { %v144_v8 = vmul.f32 %v306_v6, %v143_v7 }
  0xac   : > { %v145_v9 = vmul.f32 0.5, %v144_v8 }
  0xae   : > { %v146_v10 = vsub.f32 1.5, %v145_v9 }
  0xb0   : > { %v147_v11 = vmul.f32 %v306_v6, %v146_v10 }
  0xb2   : > { %v151_v12 = vsel %vm150_vm2, %v306_v6, %v147_v11 }
  0xb3   : > { %v152_v13 = vmul.f32 %v151_v12, %v135_v0  ;;  %v153_v14 = vmul.f32 %v151_v12, %v136_v1 }
  0xb5   : > { %154 = vst [vmem:[%s134_s26] sm:$0xff] %v152_v13 }
  0xb6   : > { %155 = vst [vmem:[%s134_s26 + $0x8] sm:$0xff] %v153_v14 }
  0xb7   : > { %364 = shalt.err (!%p361_p4)
}
  0xb8   : > { %261 = dma.vmem_to_hbm [thread:$0]  (%p465_p11), %s171_s27, 256, %s173_s28, %s157_s10  }
  0xb9 PF: > { %s184_s13 = sand.u32 1, %s391_s6   ;;  %p549_p7 = scmp.ge.s32.totalorder %s403_s9, 2 }
  0xba   : > { %s185_s14 = scalar_lea.sflag [#allocation4], %s184_s13 }
  0xbb   : > { %p268_p5 = pnand %p549_p7, %p469_p12 }
  0xbd   : > { %p269_p8 = pneg %p268_p5 }
  0xbf   : > { %386 = dma.done.wait (%p269_p8), %s185_s14, 256  }
  0xc0   : > { %388 = vsyncadd (%p269_p8), %s185_s14, 4294967040  ;;  %p14_p10 = scmp.ge.s32.totalorder %s440_s12, 4   ;;  %s550_s6 = smov %s395_s7 }
  0xc1   : > { %s551_s7 = smov %s399_s8  ;;  %s552_s8 = smov %s452_s15 }
  0xc2   : > { %s553_s9 = smov %s440_s12  ;;  %16 = sbr.rel (!%p14_p10) target bundleno = 5 (0x5), region = 69 }
  0xc7   :  { %191 = vsyncpa [#allocation3], 1 }
  0xc8   :  { %193 = vsyncpa [#allocation3 + $0x1], 1 }
  0xc9   :  { %194 = vsyncpa [#allocation4], 1 }
  0xca   :  { %196 = vsyncpa [#allocation4 + $0x1], 1 }

</bundles_post_ra>
